<compile_context>
chip_gen: v6e
topology: v6e:2x2x1
jax: 0.10.0
libtpu: 0.0.40
codegen_flags: <defaults>
</compile_context>

<pallas_src>
import functools

import jax
import jax.numpy as jnp
from jax.experimental import pallas as pl
from jax.experimental.pallas import tpu as pltpu

_LANE = 128
_NEG_BIG = -1e30  # pad-class bias: can never win the softmax max / argmax


def _round_up(x, m):
    return (x + m - 1) // m * m


def ema_teacher_kernel(x_ref, w_ref, b_ref, label_ref, prob_ref, acc_ref):
    """One (N-tile, HW-tile) grid step of the fused EMA-teacher forward.

    x_ref     : (TN, C, THW)  bf16  image block (tile of flattened spatial axis)
    w_ref     : (C, Kp)       f32   EMA head weight, pre-scaled by 1/HW
    b_ref     : (1, Kp)       f32   EMA head bias (-1e30 on padded classes)
    label_ref : (TN, 128)     i32   pseudo_label broadcast across lanes
    prob_ref  : (TN, 128)     f32   pseudo_prob  broadcast across lanes
    acc_ref   : (TN, C, 128)  f32   lane-wide partial-sum accumulator (scratch)
    """
    hw_step = pl.program_id(1)

    @pl.when(hw_step == 0)
    def _init():
        acc_ref[...] = jnp.zeros_like(acc_ref)

    # --- pooling: pure VPU accumulation of 128-lane chunks (no per-step XLU) ---
    xb = x_ref[...].astype(jnp.float32)                    # (TN, C, THW)
    acc = acc_ref[...]                                     # (TN, C, 128)
    for j in range(xb.shape[2] // _LANE):                  # static unrolled
        acc = acc + xb[:, :, j * _LANE:(j + 1) * _LANE]
    acc_ref[...] = acc

    # --- epilogue on last HW tile: head matmul + softmax-max / argmax ---------
    @pl.when(hw_step == pl.num_programs(1) - 1)
    def _finalize():
        feat = jnp.sum(acc_ref[...], axis=2)               # (TN, C) one XLU reduce
        logits = jnp.dot(feat, w_ref[...],
                         preferred_element_type=jnp.float32) + b_ref[...]  # (TN, Kp)
        m = jnp.max(logits, axis=1, keepdims=True)                         # (TN, 1)
        denom = jnp.sum(jnp.exp(logits - m), axis=1, keepdims=True)        # (TN, 1)
        # max softmax prob = exp(m - m) / denom = 1 / denom  (exact).
        pmax = pl.reciprocal(denom, approx=False)
        kp = logits.shape[1]
        cls_idx = jax.lax.broadcasted_iota(jnp.int32, logits.shape, 1)
        # argmax(softmax) == argmax(logits); first-occurrence ties like torch.max.
        label = jnp.min(jnp.where(logits == m, cls_idx, kp),
                        axis=1, keepdims=True)                             # (TN, 1)

        tn, lanes = label_ref.shape
        label_ref[...] = jnp.broadcast_to(label, (tn, lanes)).astype(jnp.int32)
        prob_ref[...] = jnp.broadcast_to(pmax, (tn, lanes)).astype(jnp.float32)


@functools.partial(jax.jit, static_argnames=("pseudo_label_weight",))
def ema_teacher_forward(target_img, w_ema, b_ema, pseudo_label_weight="prob"):
    """JAX wrapper: glue reshapes / padding / scale-folding + tiled pallas_call."""
    n, c, h, w = target_img.shape
    hw = h * w
    k = w_ema.shape[1]

    tn = 8                                        # N tile (sublane-friendly)
    thw = 512 if hw >= 512 else _LANE             # HW tile (>=512 lanes when possible)
    n_pad = _round_up(n, tn)
    hw_pad = _round_up(hw, thw)
    k_pad = _round_up(k, _LANE)

    # NCHW -> (N, C, HW) in bf16 (halves HBM traffic); zero-pad N / HW.
    x3 = target_img.reshape(n, c, hw).astype(jnp.bfloat16)
    x3 = jnp.pad(x3, ((0, n_pad - n), (0, 0), (0, hw_pad - hw)))

    # Fold the 1/HW mean into the tiny head weight; pad classes to a full lane
    # group (zeros in W, -1e30 bias so padded classes never win).
    w_p = jnp.pad(w_ema.astype(jnp.float32) / hw, ((0, 0), (0, k_pad - k)))
    b_p = jnp.pad(b_ema.astype(jnp.float32).reshape(1, k),
                  ((0, 0), (0, k_pad - k)), constant_values=_NEG_BIG)

    grid = (n_pad // tn, hw_pad // thw)

    vmem_bytes = (2 * tn * c * thw * 2            # double-buffered bf16 input block
                  + 2 * (c + 1) * k_pad * 4       # weight + bias buffers
                  + 2 * 2 * tn * _LANE * 4        # double-buffered output slabs
                  + tn * c * _LANE * 4            # accumulator scratch
                  + (2 << 20))                    # headroom
    vmem_limit = int(min(48 << 20, max(16 << 20, vmem_bytes)))

    cost = pl.CostEstimate(
        flops=n_pad * c * hw_pad + 2 * n_pad * c * k_pad + 6 * n_pad * k_pad,
        transcendentals=n_pad * k_pad,
        bytes_accessed=n_pad * c * hw_pad * 2 + (c + 1) * k_pad * 4
        + 2 * n_pad * _LANE * 4,
    )

    label_out, prob_out = pl.pallas_call(
        ema_teacher_kernel,
        grid=grid,
        in_specs=[
            pl.BlockSpec((tn, c, thw), lambda i, j: (i, 0, j)),
            pl.BlockSpec((c, k_pad), lambda i, j: (0, 0)),
            pl.BlockSpec((1, k_pad), lambda i, j: (0, 0)),
        ],
        out_specs=(
            pl.BlockSpec((tn, _LANE), lambda i, j: (i, 0)),
            pl.BlockSpec((tn, _LANE), lambda i, j: (i, 0)),
        ),
        out_shape=(
            jax.ShapeDtypeStruct((n_pad, _LANE), jnp.int32),
            jax.ShapeDtypeStruct((n_pad, _LANE), jnp.float32),
        ),
        scratch_shapes=[pltpu.VMEM((tn, c, _LANE), jnp.float32)],
        compiler_params=pltpu.CompilerParams(
            dimension_semantics=("parallel", "arbitrary"),
            vmem_limit_bytes=vmem_limit),
        cost_estimate=cost,
    )(x3, w_p, b_p)

    pseudo_label = label_out[:n, 0]                # (N,) int32
    pseudo_prob = prob_out[:n, 0]                  # (N,) float32

    if pseudo_label_weight is None:
        pseudo_weight = jnp.float32(1.0)           # torch.tensor(1.0)
    elif pseudo_label_weight == "prob":
        pseudo_weight = pseudo_prob
    else:
        raise NotImplementedError(pseudo_label_weight)
    return pseudo_label, pseudo_weight


def make_ema_params(key, num_channels, num_classes, alpha=0.999, it=1):
    """Deterministic synthetic student params + EMA-teacher weight update.

    Mirrors EMATeacher.update_weights: iter==0 copies student params into the
    EMA model, iter>0 blends with alpha_teacher = min(1 - 1/(iter+1), alpha).
    """
    k1, k2, k3, k4 = jax.random.split(key, 4)
    w0 = 0.1 * jax.random.normal(k1, (num_channels, num_classes), jnp.float32)
    b0 = 0.1 * jax.random.normal(k2, (num_classes,), jnp.float32)
    w1 = w0 + 0.01 * jax.random.normal(k3, (num_channels, num_classes), jnp.float32)
    b1 = b0 + 0.01 * jax.random.normal(k4, (num_classes,), jnp.float32)

    ema_w, ema_b = w0, b0                                   # iter == 0: copy
    alpha_teacher = min(1.0 - 1.0 / (it + 1), alpha)        # iter > 0: blend
    ema_w = alpha_teacher * ema_w + (1.0 - alpha_teacher) * w1
    ema_b = alpha_teacher * ema_b + (1.0 - alpha_teacher) * b1
    return ema_w, ema_b


if __name__ == "__main__":
    key = jax.random.PRNGKey(0)
    k_img, k_par = jax.random.split(key)

    N, C, H, W = 2, 4, 16, 16     # small NCHW input, matches torch convention
    NUM_CLASSES = 8

    target_img = jax.random.normal(k_img, (N, C, H, W), dtype=jnp.float32)
    ema_w, ema_b = make_ema_params(k_par, C, NUM_CLASSES, alpha=0.999, it=1)

    pseudo_label, pseudo_weight = ema_teacher_forward(
        target_img, ema_w, ema_b, pseudo_label_weight="prob")
    jax.block_until_ready((pseudo_label, pseudo_weight))

    # sanity check vs pure-JAX reference (same bf16 input quantization as kernel)
    x_q = target_img.astype(jnp.bfloat16).astype(jnp.float32)
    feat_ref = jnp.mean(x_q.reshape(N, C, H * W), axis=2)
    logits_ref = feat_ref @ ema_w + ema_b
    probs_ref = jax.nn.softmax(logits_ref, axis=1)
    assert jnp.array_equal(pseudo_label, jnp.argmax(probs_ref, axis=1))
    assert jnp.allclose(pseudo_weight, jnp.max(probs_ref, axis=1), atol=1e-4)

    print("KERNEL_OK")
</pallas_src>

<mosaic_0001>
module attributes {stable_mosaic.version = 11 : i64} {
  func.func @ema_teacher_kernel(%arg0: i32, %arg1: i32, %arg2: memref<8x4x128xbf16, #tpu.memory_space<vmem>>, %arg3: memref<4x128xf32, #tpu.memory_space<vmem>>, %arg4: memref<1x128xf32, #tpu.memory_space<vmem>>, %arg5: memref<8x128xi32, #tpu.memory_space<vmem>>, %arg6: memref<8x128xf32, #tpu.memory_space<vmem>>, %arg7: memref<8x4x128xf32, #tpu.memory_space<vmem>>) attributes {dimension_semantics = [#tpu.dimension_semantics<parallel>, #tpu.dimension_semantics<arbitrary>], iteration_bounds = array<i64: 1, 2>, scalar_prefetch = 0 : i64, scratch_operands = 1 : i64, tpu.core_type = #tpu.core_type<tc>, window_params = [{transform_indices = @transform_0, window_bounds = array<i64: 8, 4, 128>}, {pipeline_mode = #tpu.pipeline_mode<synchronous>, transform_indices = @transform_1, window_bounds = array<i64: 4, 128>}, {pipeline_mode = #tpu.pipeline_mode<synchronous>, transform_indices = @transform_2, window_bounds = array<i64: 1, 128>}, {transform_indices = @transform_3, window_bounds = array<i64: 8, 128>}, {transform_indices = @transform_4, window_bounds = array<i64: 8, 128>}]} {
    %c0_i32 = arith.constant 0 : i32
    %0 = arith.cmpi eq, %arg1, %c0_i32 : i32
    %1 = arith.extui %0 : i1 to i32
    %c0_i32_0 = arith.constant 0 : i32
    %2 = arith.cmpi ne, %1, %c0_i32_0 : i32
    scf.if %2 {
      %cst = arith.constant 0.000000e+00 : f32
      %11 = vector.broadcast %cst : f32 to vector<8x4x128xf32>
      %c0_10 = arith.constant 0 : index
      %c0_11 = arith.constant 0 : index
      %c0_12 = arith.constant 0 : index
      %12 = vector.load %arg7[%c0_10, %c0_11, %c0_12] : memref<8x4x128xf32, #tpu.memory_space<vmem>>, vector<8x4x128xf32>
      tpu.vector_store %arg7[%c0_10, %c0_11, %c0_12], %11 {strides = array<i32>} : memref<8x4x128xf32, #tpu.memory_space<vmem>>, vector<8x4x128xf32>,
    } else {
    }
    %c0 = arith.constant 0 : index
    %c0_1 = arith.constant 0 : index
    %c0_2 = arith.constant 0 : index
    %3 = vector.load %arg2[%c0, %c0_1, %c0_2] : memref<8x4x128xbf16, #tpu.memory_space<vmem>>, vector<8x4x128xbf16>
    %4 = arith.extf %3 : vector<8x4x128xbf16> to vector<8x4x128xf32>
    %c0_3 = arith.constant 0 : index
    %c0_4 = arith.constant 0 : index
    %c0_5 = arith.constant 0 : index
    %5 = vector.load %arg7[%c0_3, %c0_4, %c0_5] : memref<8x4x128xf32, #tpu.memory_space<vmem>>, vector<8x4x128xf32>
    %6 = arith.addf %5, %4 : vector<8x4x128xf32>
    %c0_6 = arith.constant 0 : index
    %c0_7 = arith.constant 0 : index
    %c0_8 = arith.constant 0 : index
    %7 = vector.load %arg7[%c0_6, %c0_7, %c0_8] : memref<8x4x128xf32, #tpu.memory_space<vmem>>, vector<8x4x128xf32>
    tpu.vector_store %arg7[%c0_6, %c0_7, %c0_8], %6 {strides = array<i32>} : memref<8x4x128xf32, #tpu.memory_space<vmem>>, vector<8x4x128xf32>,
    %c1_i32 = arith.constant 1 : i32
    %8 = arith.cmpi eq, %arg1, %c1_i32 : i32
    %9 = arith.extui %8 : i1 to i32
    %c0_i32_9 = arith.constant 0 : i32
    %10 = arith.cmpi ne, %9, %c0_i32_9 : i32
    scf.if %10 {
      %c0_10 = arith.constant 0 : index
      %c0_11 = arith.constant 0 : index
      %c0_12 = arith.constant 0 : index
      %11 = vector.load %arg7[%c0_10, %c0_11, %c0_12] : memref<8x4x128xf32, #tpu.memory_space<vmem>>, vector<8x4x128xf32>
      %cst = arith.constant dense<0.000000e+00> : vector<8x4xf32>
      %12 = vector.multi_reduction <add>, %11, %cst [2] : vector<8x4x128xf32> to vector<8x4xf32>
      %c0_13 = arith.constant 0 : index
      %c0_14 = arith.constant 0 : index
      %13 = vector.load %arg3[%c0_13, %c0_14] : memref<4x128xf32, #tpu.memory_space<vmem>>, vector<4x128xf32>
      %cst_15 = arith.constant dense<0.000000e+00> : vector<8x128xf32>
      %14 = tpu.matmul %12, %13, %cst_15 {dimension_numbers = #tpu.dot_dimension_numbers<[1], [0], [0], [1], [0, 0, 1, 1], [], []>} : vector<8x4xf32>, vector<4x128xf32>, vector<8x128xf32> -> vector<8x128xf32>
      %c0_16 = arith.constant 0 : index
      %c0_17 = arith.constant 0 : index
      %15 = vector.load %arg4[%c0_16, %c0_17] : memref<1x128xf32, #tpu.memory_space<vmem>>, vector<1x128xf32>
      %16 = vector.broadcast %15 : vector<1x128xf32> to vector<8x128xf32>
      %17 = arith.addf %14, %16 : vector<8x128xf32>
      %cst_18 = arith.constant dense<0xFF800000> : vector<8xf32>
      %18 = vector.multi_reduction <maximumf>, %17, %cst_18 [1] : vector<8x128xf32> to vector<8xf32>
      %19 = vector.shape_cast %18 : vector<8xf32> to vector<8x1xf32>
      %20 = vector.broadcast %19 : vector<8x1xf32> to vector<8x128xf32>
      %21 = arith.subf %17, %20 : vector<8x128xf32>
      %22 = math.exp %21 : vector<8x128xf32>
      %cst_19 = arith.constant dense<0.000000e+00> : vector<8xf32>
      %23 = vector.multi_reduction <add>, %22, %cst_19 [1] : vector<8x128xf32> to vector<8xf32>
      %24 = vector.shape_cast %23 : vector<8xf32> to vector<8x1xf32>
      %25 = tpu.reciprocal %24 : vector<8x1xf32> -> vector<8x1xf32>
      %26 = tpu.iota {dimensions = array<i32: 1>} : vector<8x128xi32>
      %27 = vector.broadcast %19 : vector<8x1xf32> to vector<8x128xf32>
      %28 = arith.cmpf oeq, %17, %27 : vector<8x128xf32>
      %c128_i32 = arith.constant 128 : i32
      %29 = vector.broadcast %c128_i32 : i32 to vector<8x128xi32>
      %30 = arith.select %28, %26, %29 : vector<8x128xi1>, vector<8x128xi32>
      %cst_20 = arith.constant dense<2147483647> : vector<8xi32>
      %31 = vector.multi_reduction <minsi>, %30, %cst_20 [1] : vector<8x128xi32> to vector<8xi32>
      %32 = vector.shape_cast %31 : vector<8xi32> to vector<8x1xi32>
      %33 = vector.shape_cast %32 : vector<8x1xi32> to vector<8x1xi32>
      %34 = vector.broadcast %33 : vector<8x1xi32> to vector<8x128xi32>
      %c0_21 = arith.constant 0 : index
      %c0_22 = arith.constant 0 : index
      %35 = vector.load %arg5[%c0_21, %c0_22] : memref<8x128xi32, #tpu.memory_space<vmem>>, vector<8x128xi32>
      tpu.vector_store %arg5[%c0_21, %c0_22], %34 {strides = array<i32>} : memref<8x128xi32, #tpu.memory_space<vmem>>, vector<8x128xi32>,
      %36 = vector.shape_cast %25 : vector<8x1xf32> to vector<8x1xf32>
      %37 = vector.broadcast %36 : vector<8x1xf32> to vector<8x128xf32>
      %c0_23 = arith.constant 0 : index
      %c0_24 = arith.constant 0 : index
      %38 = vector.load %arg6[%c0_23, %c0_24] : memref<8x128xf32, #tpu.memory_space<vmem>>, vector<8x128xf32>
      tpu.vector_store %arg6[%c0_23, %c0_24], %37 {strides = array<i32>} : memref<8x128xf32, #tpu.memory_space<vmem>>, vector<8x128xf32>,
    } else {
    }
    return
  }
  func.func @transform_0(%arg0: i32, %arg1: i32) -> (i32, i32, i32) {
    %c0_i32 = arith.constant 0 : i32
    %c0_i32_0 = arith.constant 0 : i32
    return %arg0, %c0_i32, %arg1 : i32, i32, i32
  }
  func.func @transform_1(%arg0: i32, %arg1: i32) -> (i32, i32) {
    %c0_i32 = arith.constant 0 : i32
    %c0_i32_0 = arith.constant 0 : i32
    %c0_i32_1 = arith.constant 0 : i32
    return %c0_i32, %c0_i32_0 : i32, i32
  }
  func.func @transform_2(%arg0: i32, %arg1: i32) -> (i32, i32) {
    %c0_i32 = arith.constant 0 : i32
    %c0_i32_0 = arith.constant 0 : i32
    %c0_i32_1 = arith.constant 0 : i32
    return %c0_i32, %c0_i32_0 : i32, i32
  }
  func.func @transform_3(%arg0: i32, %arg1: i32) -> (i32, i32) {
    %c0_i32 = arith.constant 0 : i32
    %c0_i32_0 = arith.constant 0 : i32
    return %arg0, %c0_i32 : i32, i32
  }
  func.func @transform_4(%arg0: i32, %arg1: i32) -> (i32, i32) {
    %c0_i32 = arith.constant 0 : i32
    %c0_i32_0 = arith.constant 0 : i32
    return %arg0, %c0_i32 : i32, i32
  }
}

</mosaic_0001>

<bundles_post_ra>
// kernel: ema_teacher_forward.1
= control target key start
LH: loop header
LB: loop body
LE: loop exit
PB: predicated region body
PF: predicated region fallthrough
CT: control target
= control target key end

     0   :  { %s784_s15 = smov 0   ;;  %s786_s16 = smov 0   ;;  %s878_s0 = inlined_call_operand.vmem [shape: bf16[8,4,256], index: 0, kind: input, shape index: {}]   ;;  %s879_s1 = inlined_call_operand.vmem [shape: f32[4,128], index: 1, kind: input, shape index: {}]   ;;  %s880_s2 = inlined_call_operand.vmem [shape: f32[1,128], index: 2, kind: input, shape index: {}]   ;;  %s881_s3 = inlined_call_operand.vmem [shape: s32[8,128], index: 3, kind: output, shape index: {0}]   ;;  %s882_s4 = inlined_call_operand.vmem [shape: f32[8,128], index: 4, kind: output, shape index: {1}]  }
   0x1   :  { %s788_s17 = smov 0   ;;  %s790_s18 = smov 0  }
   0x2   :  { %s792_s19 = smov 0  }
   0x3 LB: > { %s24_s20 = sadd.s32 1, %s750_s18  ;;  %p43_p1 = scmp.ne.s32.totalorder %s742_s16, %s738_s15  ;;  %s754_s19 = sphi %s792_s19, %s15_s19   ;;  %s750_s18 = sphi %s790_s18, %s886_s18   ;;  %s746_s17 = sphi %s788_s17, %s885_s17   ;;  %s742_s16 = sphi %s786_s16, %s884_s16   ;;  %s738_s15 = sphi %s784_s15, %s883_s15  }
   0x4   : > { %p25_p0 = scmp.ge.s32.totalorder %s24_s20, 2  ;;  %p44_p2 = scmp.eq.s32.totalorder %s754_s19, 0 }
   0x5   : > { %s36_s22 = sadd.s32 1, %s742_s16  ;;  %p648_p5 = scmp.ge.s32.totalorder %s754_s19, 2 }
   0x6   : > { %s888_s20 = smov (%p25_p0, %s24_s20), 0  ;;  %p45_p3 = por %p44_p2, %p43_p1 }
   0x7   : > { %s32_s21 = ssub.s32 %s750_s18, %s888_s20  ;;  %169 = sbr.rel (%p648_p5) target bundleno = 21 (0x15), region = 24 }
   0x8   : > { %p34_p4 = scmp.eq.s32.totalorder %s32_s21, 0 }
   0xa   : > { %s819_s23 = scalar_select %p34_p4, %s742_s16, %s36_s22  }
   0xc   : > { %172 = sbr.rel (!%p45_p3) target bundleno = 21 (0x15), region = 28  ;;  %s174_s24 = sand.u32 (%p45_p3), 1, %s742_s16  }
   0xd   : > { %s650_s25 = sshll.u32 (%p45_p3), %s750_s18, 1  ;;  %s649_s26 = sshll.u32 (%p45_p3), %s174_s24, 4 }
   0xe   : > { %s181_s29 = scalar_lea.vmem (%p45_p3), %s878_s0, %s650_s25  ;;  %s176_s30 = scalar_lea.vmem (%p45_p3), [#allocation3], %s649_s26 }
   0xf   : > { %v198_v0 = vld [vmem:[%s181_s29] sm:$0x3] (%p45_p3)  ;;  %v200_v1 = vld [vmem:[%s181_s29 + $0x4] sm:$0x3] (%p45_p3)  ;;  %v202_v2 = vld [vmem:[%s181_s29 + $0x8] sm:$0x3] (%p45_p3) }
  0x10   : > { %199 = vst [vmem:[%s176_s30] sm:$0x3] (%p45_p3), %v198_v0  ;;  %201 = vst [vmem:[%s176_s30 + $0x2] sm:$0x3] (%p45_p3), %v200_v1  ;;  %v204_v3 = vld [vmem:[%s181_s29 + $0xc] sm:$0x3] (%p45_p3) }
  0x11   : > { %v206_v4 = vld [vmem:[%s181_s29 + $0x10] sm:$0x3]  ;;  %203 = vst [vmem:[%s176_s30 + $0x4] sm:$0x3] %v202_v2  ;;  %205 = vst [vmem:[%s176_s30 + $0x6] sm:$0x3] %v204_v3 }
  0x12   : > { %207 = vst [vmem:[%s176_s30 + $0x8] sm:$0x3] %v206_v4  ;;  %v208_v5 = vld [vmem:[%s181_s29 + $0x14] sm:$0x3]  ;;  %v210_v6 = vld [vmem:[%s181_s29 + $0x18] sm:$0x3] }
  0x13   : > { %v212_v7 = vld [vmem:[%s181_s29 + $0x1c] sm:$0x3]  ;;  %209 = vst [vmem:[%s176_s30 + $0xa] sm:$0x3] %v208_v5  ;;  %211 = vst [vmem:[%s176_s30 + $0xc] sm:$0x3] %v210_v6 }
  0x14   : > { %213 = vst [vmem:[%s176_s30 + $0xe] sm:$0x3] %v212_v7 }
  0x15 PF: > { %p651_p6 = scmp.ge.s32.totalorder %s754_s19, 1  ;;  %p252_p7 = scmp.lt.s32.totalorder %s754_s19, 3 }
  0x17   : > { %p253_p8 = pnand %p651_p6, %p252_p7 }
  0x18   : > { %s259_s5 = sand.u32 (!%p253_p8), 1, %s738_s15   ;;  %p653_p9 = scmp.ne.s32.totalorder (!%p253_p8), %s746_s17, 0 }
  0x19   : > { %256 = sbr.rel (%p253_p8) target bundleno = 831 (0x33f), region = 69  ;;  %s652_s6 = sshll.u32 (!%p253_p8), %s259_s5, 4 }
  0x1a   : > { %s830_s7 = scalar_lea.vmem (!%p253_p8), [#allocation3], %s652_s6 }
  0x1e   : > { %299 = sbr.rel (%p653_p9) target bundleno = 40 (0x28), region = 77 }
  0x23   : > { %v756_v8 = vmov 0.0  }
  0x24   : > { %300 = vst [vmem:[#allocation2] sm:$0xf] %v756_v8  ;;  %301 = vst [vmem:[#allocation2 + $0x4] sm:$0xf] %v756_v8 }
  0x25   : > { %302 = vst [vmem:[#allocation2 + $0x8] sm:$0xf] %v756_v8  ;;  %303 = vst [vmem:[#allocation2 + $0xc] sm:$0xf] %v756_v8 }
  0x26   : > { %304 = vst [vmem:[#allocation2 + $0x10] sm:$0xf] %v756_v8  ;;  %305 = vst [vmem:[#allocation2 + $0x14] sm:$0xf] %v756_v8 }
  0x27   : > { %306 = vst [vmem:[#allocation2 + $0x18] sm:$0xf] %v756_v8  ;;  %307 = vst [vmem:[#allocation2 + $0x1c] sm:$0xf] %v756_v8 }
  0x28 PF: > { %v308_v9 = vld [vmem:[%s830_s7] sm:$0x3]  ;;  %v309_v11 = vld [vmem:[%s830_s7 + $0x2] sm:$0x3]  ;;  %v310_v15 = vld [vmem:[%s830_s7 + $0x4] sm:$0x3] }
  0x29   : > { %v316_v12 = vunpack.c.l.bf16 %v308_v9  ;;  %v317_v13 = vunpack.c.l.bf16 %v309_v11  ;;  %v318_v17 = vunpack.c.l.bf16 %v310_v15  ;;  %v311_v18 = vld [vmem:[%s830_s7 + $0x6] sm:$0x3]  ;;  %v312_v20 = vld [vmem:[%s830_s7 + $0x8] sm:$0x3]  ;;  %v313_v26 = vld [vmem:[%s830_s7 + $0xa] sm:$0x3] }
  0x2a   : > { %v319_v23 = vunpack.c.l.bf16 %v311_v18  ;;  %v320_v24 = vunpack.c.l.bf16 %v312_v20  ;;  %v321_v29 = vunpack.c.l.bf16 %v313_v26  ;;  %v314_v30 = vld [vmem:[%s830_s7 + $0xc] sm:$0x3]  ;;  %v315_v32 = vld [vmem:[%s830_s7 + $0xe] sm:$0x3]  ;;  %p654_p10 = scmp.ne.s32.totalorder %s746_s17, 1 }
  0x2b   : > { %v324_v10 = vld [vmem:[#allocation2] sm:$0xf]  ;;  %v325_v14 = vld [vmem:[#allocation2 + $0x4] sm:$0xf]  ;;  %v322_v35 = vunpack.c.l.bf16 %v314_v30  ;;  %v323_v36 = vunpack.c.l.bf16 %v315_v32 }
  0x2c   : > { %v326_v16 = vld [vmem:[#allocation2 + $0x8] sm:$0xf]  ;;  %v327_v19 = vld [vmem:[#allocation2 + $0xc] sm:$0xf]  ;;  %v332_v21 = vadd.f32 %v324_v10, %v316_v12  ;;  %v333_v22 = vadd.f32 %v325_v14, %v317_v13 }
  0x2d   : > { %v328_v25 = vld [vmem:[#allocation2 + $0x10] sm:$0xf]  ;;  %v329_v27 = vld [vmem:[#allocation2 + $0x14] sm:$0xf]  ;;  %v334_v28 = vadd.f32 %v326_v16, %v318_v17  ;;  %v335_v33 = vadd.f32 %v327_v19, %v319_v23 }
  0x2e   : > { %v330_v31 = vld [vmem:[#allocation2 + $0x18] sm:$0xf]  ;;  %340 = vst [vmem:[#allocation2] sm:$0xf] %v332_v21  ;;  %341 = vst [vmem:[#allocation2 + $0x4] sm:$0xf] %v333_v22  ;;  %v336_v34 = vadd.f32 %v328_v25, %v320_v24  ;;  %v337_v38 = vadd.f32 %v329_v27, %v321_v29 }
  0x2f   : > { %v331_v37 = vld [vmem:[#allocation2 + $0x1c] sm:$0xf]  ;;  %342 = vst [vmem:[#allocation2 + $0x8] sm:$0xf] %v334_v28  ;;  %343 = vst [vmem:[#allocation2 + $0xc] sm:$0xf] %v335_v33  ;;  %v338_v39 = vadd.f32 %v330_v31, %v322_v35 }
  0x30   : > { %344 = vst [vmem:[#allocation2 + $0x10] sm:$0xf] %v336_v34  ;;  %v339_v40 = vadd.f32 %v331_v37, %v323_v36  ;;  %345 = vst [vmem:[#allocation2 + $0x14] sm:$0xf] %v337_v38  ;;  %351 = sbr.rel (%p654_p10) target bundleno = 831 (0x33f), region = 81 }
  0x31   : > { %346 = vst [vmem:[#allocation2 + $0x18] sm:$0xf] %v338_v39 }
  0x32   : > { %347 = vst [vmem:[#allocation2 + $0x1c] sm:$0xf] %v339_v40 }
  0x35   : > { %v352_v41 = vld [vmem:[#allocation2] sm:$0xf]  ;;  %vm360_vm0 = vcmask 1043456   ;;  %v353_v45 = vld [vmem:[#allocation2 + $0x4] sm:$0xf]  ;;  %v757_v57 = vmov 0.0   ;;  %v401_v59 = vlaneseq }
  0x36   : > { %v354_v42 = vld [vmem:[#allocation2 + $0x8] sm:$0xf]  ;;  %v361_v43 = vsel %vm360_vm0, %v352_v41, 0.0  ;;  %v355_v46 = vld [vmem:[#allocation2 + $0xc] sm:$0xf]  ;;  %v364_v47 = vsel %vm360_vm0, %v353_v45, 0.0  ;;  %664 = vmatprep.subr.mxu0 %v757_v57 }
  0x37   : > { %v367_v44 = vsel %vm360_vm0, %v354_v42, 0.0  ;;  %362 = vadd.xlane.f32.xlu0 %v361_v43  ;;  %v370_v48 = vsel %vm360_vm0, %v355_v46, 0.0  ;;  %v356_v49 = vld [vmem:[#allocation2 + $0x10] sm:$0xf]  ;;  %v357_v50 = vld [vmem:[#allocation2 + $0x14] sm:$0xf] }
  0x38   : > { %368 = vadd.xlane.f32.xlu1 %v367_v44  ;;  %v373_v51 = vsel %vm360_vm0, %v356_v49, 0.0  ;;  %v376_v52 = vsel %vm360_vm0, %v357_v50, 0.0  ;;  %v358_v53 = vld [vmem:[#allocation2 + $0x18] sm:$0xf]  ;;  %v385_v58 = vld [vmem:[%s879_s1] sm:$0xf] }
  0x39   : > { %v359_v54 = vld [vmem:[#allocation2 + $0x1c] sm:$0xf]  ;;  %v379_v55 = vsel %vm360_vm0, %v358_v53, 0.0  ;;  %665 = vmatpush3.msk.msra.mxu0 %vm360_vm0, %v385_v58  ;;  %vm758_vm1 = vmmov 0   ;;  %v402_v60 = vand.u32 127, %v401_v59  ;;  %v404_v61 = vshrl.u32 %v401_v59, 7 }
  0x3a   : > { %v382_v56 = vsel %vm360_vm0, %v359_v54, 0.0  ;;  %666 = vmatprep.mubr.msk.f32.mxu0 %vm758_vm1, %v757_v57  ;;  %vm435_vm2 = vcmask 1041409   ;;  %vm437_vm3 = vcmask 1042434   ;;  %vm439_vm4 = vcmask 1043459   ;;  %v655_v22 = vld [vmem:[%s880_s2] ss:$0 sm:$0xff] }
  0x3b   : > { %365 = vadd.xlane.f32.xlu0 %v364_v47  ;;  %v405_v0 = vsub.s32 %v402_v60, %v404_v61  ;;  %vm441_vm5 = vcmask 1044484   ;;  %vm443_vm6 = vcmask 1045509   ;;  %vm445_vm7 = vcmask 1046534  }
  0x3c   : > { %371 = vadd.xlane.f32.xlu1 %v370_v48  ;;  %vm447_vm8 = vcmask 1047559   ;;  %vm449_vm9 = vcmask 31744  }
  0x3f   : > { %374 = vadd.xlane.f32.xlu0 %v373_v51 }
  0x40   : > { %377 = vadd.xlane.f32.xlu1 %v376_v52 }
  0x43   : > { %380 = vadd.xlane.f32.xlu0 %v379_v55 }
  0x44   : > { %383 = vadd.xlane.f32.xlu1 %v382_v56 }
  0xc0   : > { %v363_v62 = vpop.xlane.xlu0 %362 }
  0xc1   : > { %v369_v63 = vpop.xlane.xlu1 %368  ;;  %v406_v3 = vrot.slane %v363_v62, %v405_v0 }
  0xc2   : > { %v414_v6 = vrot.slane %v369_v63, %v405_v0 }
  0xc4   : > { %v366_v1 = vpop.xlane.xlu0 %365 }
  0xc5   : > { %v372_v2 = vpop.xlane.xlu1 %371  ;;  %v410_v4 = vrot.slane %v366_v1, %v405_v0 }
  0xc6   : > { %v418_v5 = vrot.slane %v372_v2, %v405_v0 }
  0xc7   : > { %v436_v7 = vsel %vm435_vm2, %v410_v4, %v406_v3 }
  0xc8   : > { %v438_v8 = vsel %vm437_vm3, %v414_v6, %v436_v7  ;;  %v375_v9 = vpop.xlane.xlu0 %374 }
  0xc9   : > { %v378_v10 = vpop.xlane.xlu1 %377  ;;  %v440_v11 = vsel %vm439_vm4, %v418_v5, %v438_v8  ;;  %v422_v12 = vrot.slane %v375_v9, %v405_v0 }
  0xca   : > { %v426_v13 = vrot.slane %v378_v10, %v405_v0 }
  0xcb   : > { %v442_v14 = vsel %vm441_vm5, %v422_v12, %v440_v11 }
  0xcc   : > { %v381_v15 = vpop.xlane.xlu0 %380  ;;  %v444_v19 = vsel %vm443_vm6, %v426_v13, %v442_v14 }
  0xcd   : > { %v384_v16 = vpop.xlane.xlu1 %383  ;;  %v430_v17 = vrot.slane %v381_v15, %v405_v0 }
  0xce   : > { %v434_v18 = vrot.slane %v384_v16, %v405_v0 }
  0xcf   : > { %v446_v20 = vsel %vm445_vm7, %v430_v17, %v444_v19 }
  0xd0   : > { %v448_v21 = vsel %vm447_vm8, %v434_v18, %v446_v20 }
  0xd1   : > { %667 = vmatmul.mubr.msk.f32.vlgmr.msra.gmra.mxu0 %vm449_vm9, %v448_v21 }
 0x191   : > { %v521_v23 = vpop.f32.mrf.mxu0 }
 0x192   : > { %v522_v24 = vadd.f32 %v655_v22, %v521_v23 }
 0x193   : > { %v668_v25 = vpop.f32.mrf.mxu0 }
 0x194   : > { %525 = vmax.xlane.f32.xlu0 %v522_v24 }
 0x21d   : > { %v526_v26 = vpop.xlane.xlu0 %525 }
 0x21e   : > { %v527_v27 = vsub.f32 %v522_v24, %v526_v26  ;;  %vm533_vm10 = vcmp.eq.f32.partialorder %v522_v24, %v526_v26 }
 0x21f   : > { %v534_v28 = vsel %vm533_vm10, %v402_v60, 128 }
 0x220   : > { %v528_v29 = vmul.f32 1.442695, %v527_v27  ;;  %v536_v30 = vshra.s32 %v534_v28, 16  ;;  %v535_v33 = vand.u32 65535, %v534_v28 }
 0x222   : > { %712 = vpow2.f32 %v528_v29  ;;  %v538_v31 = vcvt.s32.f32 %v536_v30  ;;  %v537_v35 = vcvt.s32.f32 %v535_v33 }
 0x224   : > { %539 = vmin.xlane.f32.xlu1 %v538_v31 }
 0x22f   : > { %v713_v32 = vpop.eup %712 }
 0x230   : > { %530 = vadd.xlane.f32.xlu0 %v713_v32 }
 0x2ad   : > { %v540_v34 = vpop.xlane.xlu1 %539 }
 0x2ae   : > { %vm541_vm11 = vcmp.eq.f32.partialorder %v538_v31, %v540_v34  ;;  %v546_v39 = vcvt.f32.s32 %v540_v34 }
 0x2af   : > { %v542_v36 = vsel %vm541_vm11, %v537_v35, inf }
 0x2b0   : > { %543 = vmin.xlane.f32.xlu1 %v542_v36  ;;  %v547_v41 = vshll.u32 %v546_v39, 16 }
 0x2b9   : > { %v531_v37 = vpop.xlane.xlu0 %530 }
 0x2ba   : > { %714 = vrcp.f32 %v531_v37 }
 0x2c7   : > { %v715_v38 = vpop.eup %714 }
 0x2c8   : > { %550 = vst [vmem:[%s882_s4] sm:$0xff] %v715_v38 }
 0x339   : > { %v544_v40 = vpop.xlane.xlu1 %543 }
 0x33a   : > { %v545_v42 = vcvt.f32.s32 %v544_v40 }
 0x33c   : > { %v548_v43 = vadd.s32 %v547_v41, %v545_v42 }
 0x33e   : > { %549 = vst [vmem:[%s881_s3] sm:$0xff] %v548_v43 }
 0x33f PF: > { %s15_s19 = sadd.s32 1, %s754_s19   ;;  %s883_s15 = smov %s742_s16 }
 0x340   : > { %p12_p11 = scmp.ge.s32.totalorder %s15_s19, 4   ;;  %s884_s16 = smov %s819_s23 }
 0x341   : > { %s885_s17 = smov %s750_s18  ;;  %s886_s18 = smov %s888_s20 }
 0x342   :  { %14 = sbr.rel (!%p12_p11) target bundleno = 3 (0x3), region = 128 }

</bundles_post_ra>
